<compile_context>
chip_gen: v5e
topology: v5e:2x2
jax: 0.10.0
libtpu: 0.0.40
codegen_flags: <defaults>
</compile_context>

<pallas_src>
import jax
import jax.numpy as jnp
from jax import lax
from jax.experimental import pallas as pl
from jax.experimental.pallas import tpu as pltpu


def _round_up(x, m):
    return ((x + m - 1) // m) * m


def _pick_lanes(total):
    # Prefer a lane width that divides the flat length exactly so the wrapper
    # needs no pad and no trailing slice (reshapes are free bitcasts).
    for lanes in (512, 256, 128):
        if total % lanes == 0:
            return lanes
    return 512


def _clip_boxes_kernel(x_ref, bounds_ref, o_ref):
    # x_ref / o_ref: (block_rows, lanes) f32 view of the flattened (N, 4) boxes.
    # bounds_ref:    (2,) SMEM scalars [max_x, max_y].
    x = x_ref[...]
    max_x = bounds_ref[0]
    max_y = bounds_ref[1]
    # Column of each element within its box = flat index % 4.  `lanes` is a
    # multiple of 4, so this is just (lane index & 3) — pure VPU work.
    col = lax.broadcasted_iota(jnp.int32, x.shape, dimension=1) & 3
    hi = jnp.where(col == 2, max_x, max_y)          # cols 2/3 upper bounds
    o_ref[...] = jnp.where(col < 2,
                           jnp.maximum(x, 0.0),     # cols 0,1: clamp(min=0)
                           jnp.minimum(x, hi))      # cols 2,3: clamp(max=size)


def clip_boxes(boxes, img, size, *, target_block_bytes=2 << 20):
    """ClipBoxes.forward.  boxes: (N, 4) float.  `img` kept for signature parity."""
    del img  # bounds come from `size`, exactly as in the PyTorch module
    N, C = boxes.shape
    assert C == 4, "boxes must be (N, 4)"
    assert jnp.issubdtype(boxes.dtype, jnp.floating), "boxes must be float"
    itemsize = jnp.dtype(boxes.dtype).itemsize
    total = N * C

    lanes = _pick_lanes(total)
    padded_total = _round_up(total, lanes)
    flat = boxes.reshape(total)
    if padded_total != total:
        # <= lanes-1 elements (~2 KiB) of pad; only when N*4 isn't lane-aligned.
        flat = jnp.pad(flat, (0, padded_total - total))
    rows = padded_total // lanes
    x2d = flat.reshape(rows, lanes)

    # ~2 MiB blocks; last grid step may be partial (Pallas masks OOB writes).
    max_block_rows = max(8, target_block_bytes // (itemsize * lanes))
    block_rows = min(max_block_rows, _round_up(rows, 8))
    if block_rows >= rows:
        block_rows = rows  # single block equal to the full dim is always legal
    grid = (pl.cdiv(rows, block_rows),)

    bounds = jnp.asarray([size[0], size[1]], dtype=boxes.dtype)

    out = pl.pallas_call(
        _clip_boxes_kernel,
        out_shape=jax.ShapeDtypeStruct((rows, lanes), boxes.dtype),
        grid=grid,
        in_specs=[
            pl.BlockSpec((block_rows, lanes), lambda i: (i, 0)),
            pl.BlockSpec(memory_space=pltpu.MemorySpace.SMEM),
        ],
        out_specs=pl.BlockSpec((block_rows, lanes), lambda i: (i, 0)),
        input_output_aliases={0: 0},  # clip "in place", like the PyTorch module
        compiler_params=pltpu.CompilerParams(
            dimension_semantics=("parallel",)),
    )(x2d, bounds)

    if padded_total != total:
        return out.reshape(padded_total)[:total].reshape(N, C)
    return out.reshape(N, C)


# Pure-JAX reference of the same forward (for sanity checking the kernel).
def _reference_clip(boxes, size):
    return jnp.stack(
        [jnp.maximum(boxes[:, 0], 0.0),
         jnp.maximum(boxes[:, 1], 0.0),
         jnp.minimum(boxes[:, 2], float(size[0])),
         jnp.minimum(boxes[:, 3], float(size[1]))],
        axis=1)


if __name__ == "__main__":
    size = (16, 16)        # ClipBoxes(size=(W, H)) clamp bounds
    key = jax.random.PRNGKey(0)
    kb, ki = jax.random.split(key)
    img = jax.random.normal(ki, (2, 3, 16, 16), jnp.float32)  # unused by the op

    fwd = jax.jit(lambda b, im: clip_boxes(b, im, size))

    # Case 1: lane-aligned N (no pad, true in-place aliasing path).
    N = 256
    boxes = jax.random.uniform(kb, (N, 4), jnp.float32, minval=-8.0, maxval=24.0)
    out = fwd(boxes, img)
    jax.block_until_ready(out)
    assert out.shape == (N, 4), out.shape
    if not jnp.allclose(out, _reference_clip(boxes, size), atol=1e-6, rtol=0.0):
        raise AssertionError("Pallas ClipBoxes mismatch vs JAX reference (N=256)")

    # Case 2: non-aligned N (exercises the small pad + partial-block path).
    N2 = 1000
    boxes2 = jax.random.uniform(jax.random.PRNGKey(1), (N2, 4), jnp.float32,
                                minval=-8.0, maxval=24.0)
    out2 = jax.jit(lambda b, im: clip_boxes(b, im, size))(boxes2, img)
    jax.block_until_ready(out2)
    assert out2.shape == (N2, 4), out2.shape
    if not jnp.allclose(out2, _reference_clip(boxes2, size), atol=1e-6, rtol=0.0):
        raise AssertionError("Pallas ClipBoxes mismatch vs JAX reference (N=1000)")

    print("KERNEL_OK")
</pallas_src>

<mosaic_0001>
module attributes {stable_mosaic.version = 11 : i64} {
  func.func @_clip_boxes_kernel(%arg0: i32, %arg1: memref<2x512xf32, #tpu.memory_space<vmem>>, %arg2: memref<2xf32, #tpu.memory_space<smem>>, %arg3: memref<2x512xf32, #tpu.memory_space<vmem>>) attributes {dimension_semantics = [#tpu.dimension_semantics<parallel>], iteration_bounds = array<i64: 1>, scalar_prefetch = 0 : i64, scratch_operands = 0 : i64, tpu.core_type = #tpu.core_type<tc>, window_params = [{transform_indices = @transform_0, window_bounds = array<i64: 2, 512>}, {transform_indices = @transform_1, window_bounds = array<i64: 2>}, {transform_indices = @transform_2, window_bounds = array<i64: 2, 512>}]} {
    %c0 = arith.constant 0 : index
    %c0_0 = arith.constant 0 : index
    %0 = vector.load %arg1[%c0, %c0_0] : memref<2x512xf32, #tpu.memory_space<vmem>>, vector<2x512xf32>
    %c0_1 = arith.constant 0 : index
    %1 = memref.load %arg2[%c0_1] : memref<2xf32, #tpu.memory_space<smem>>
    %c1 = arith.constant 1 : index
    %2 = memref.load %arg2[%c1] : memref<2xf32, #tpu.memory_space<smem>>
    %3 = tpu.iota {dimensions = array<i32: 1>} : vector<2x512xi32>
    %c3_i32 = arith.constant 3 : i32
    %4 = vector.broadcast %c3_i32 : i32 to vector<2x512xi32>
    %5 = arith.andi %3, %4 : vector<2x512xi32>
    %c2_i32 = arith.constant 2 : i32
    %6 = vector.broadcast %c2_i32 : i32 to vector<2x512xi32>
    %7 = arith.cmpi eq, %5, %6 : vector<2x512xi32>
    %8 = vector.broadcast %1 : f32 to vector<2x512xf32>
    %9 = vector.broadcast %2 : f32 to vector<2x512xf32>
    %10 = arith.select %7, %8, %9 : vector<2x512xi1>, vector<2x512xf32>
    %c2_i32_2 = arith.constant 2 : i32
    %11 = vector.broadcast %c2_i32_2 : i32 to vector<2x512xi32>
    %12 = arith.cmpi slt, %5, %11 : vector<2x512xi32>
    %cst = arith.constant 0.000000e+00 : f32
    %13 = vector.broadcast %cst : f32 to vector<2x512xf32>
    %14 = arith.maximumf %0, %13 : vector<2x512xf32>
    %15 = arith.minimumf %0, %10 : vector<2x512xf32>
    %16 = arith.select %12, %14, %15 : vector<2x512xi1>, vector<2x512xf32>
    %c0_3 = arith.constant 0 : index
    %c0_4 = arith.constant 0 : index
    %17 = vector.load %arg3[%c0_3, %c0_4] : memref<2x512xf32, #tpu.memory_space<vmem>>, vector<2x512xf32>
    tpu.vector_store %arg3[%c0_3, %c0_4], %16 {strides = array<i32>} : memref<2x512xf32, #tpu.memory_space<vmem>>, vector<2x512xf32>,
    return
  }
  func.func @transform_0(%arg0: i32) -> (i32, i32) {
    %c0_i32 = arith.constant 0 : i32
    %c0_i32_0 = arith.constant 0 : i32
    return %arg0, %c0_i32 : i32, i32
  }
  func.func @transform_1(%arg0: i32) -> i32 {
    %c0_i32 = arith.constant 0 : i32
    %c0_i32_0 = arith.constant 0 : i32
    return %c0_i32 : i32
  }
  func.func @transform_2(%arg0: i32) -> (i32, i32) {
    %c0_i32 = arith.constant 0 : i32
    %c0_i32_0 = arith.constant 0 : i32
    return %arg0, %c0_i32 : i32, i32
  }
}

</mosaic_0001>

<bundles_post_ra>
// kernel: _lambda_.1
= control target key start
LH: loop header
LB: loop body
LE: loop exit
PB: predicated region body
PF: predicated region fallthrough
CT: control target
= control target key end

     0   :  { %7 = vsyncpa [#allocation3], 0  ;;  %s123_s12 = smov [#allocation2]   ;;  %s160_s0 = inlined_call_operand.vmem [shape: f32[2,512], index: 0, kind: input, shape index: {}, may-alias: {0,2}]   ;;  %s161_s1 = inlined_call_operand.vmem [shape: f32[2], index: 1, kind: input, shape index: {}]   ;;  %s162_s2 = inlined_call_operand.vmem [shape: f32[2,512], index: 2, kind: output, shape index: {}, may-alias: {0,2}]  }
   0x1   :  { %s15_s11 = sshll.u32 %s161_s1, 4  ;;  %s16_s11 = int_to_ptr.vmem [resolvable:$true] %s15_s11 }
   0x2   :  { %18 = dma.vmem_to_smem %s16_s11, 16, %s123_s12, [#allocation3]  }
   0x3   :  { %121 = dma.done.wait [#allocation3], 16  }
   0x4   :  { %122 = vsyncadd [#allocation3], 4294967280 }
   0x5   :  { %23 = sfence }
   0x6   :  { %v24_v0 = vld [vmem:[%s160_s0] sm:$0xff]  ;;  %s25_s15 = sld [smem:[#allocation2]]  ;;  %v27_v1 = vlaneseq  ;;  %vm58_vm1 = vcmask 1041408   ;;  %vm60_vm5 = vcmask 1045508   ;;  %vm62_vm6 = vcmask 1043456  }
   0x7   :  { %s107_s16 = sld [smem:[#allocation2 + $0x1]]  ;;  %v50_v2 = vmax.f32 %v24_v0, 0.0 }
   0x8   :  { %v28_v3 = vand.u32 127, %v27_v1 }
   0x9   :  { %67 = vst [vmem:[#allocation1] ss:$4 sm:$0xff] %v50_v2 }
   0xa   :  { %v29_v4 = vadd.s32 128, %v28_v3  ;;  %v30_v5 = vadd.s32 256, %v28_v3  ;;  %v31_v6 = vadd.s32 384, %v28_v3  ;;  %v32_v7 = vand.u32 3, %v28_v3 }
   0xc   :  { %v33_v8 = vand.u32 3, %v29_v4  ;;  %v34_v9 = vand.u32 3, %v30_v5  ;;  %v35_v10 = vand.u32 3, %v31_v6  ;;  %vm145_vm0 = vcmp.eq.s32.totalorder %v32_v7, 2 }
   0xd   :  { %v40_v12 = vstv %s25_s15  ;;  %v41_v13 = vstv %s107_s16  ;;  %vm46_vm8 = vcmp.lt.s32.totalorder %v32_v7, 2 }
   0xe   :  { %vm37_vm2 = vcmp.eq.s32.totalorder %v33_v8, 2  ;;  %vm38_vm3 = vcmp.eq.s32.totalorder %v34_v9, 2  ;;  %vm39_vm4 = vcmp.eq.s32.totalorder %v35_v10, 2  ;;  %v42_v14 = vsel %vm145_vm0, %v40_v12, %v41_v13 }
   0xf   :  { %v43_v15 = vsel %vm37_vm2, %v40_v12, %v41_v13  ;;  %v44_v16 = vsel %vm38_vm3, %v40_v12, %v41_v13  ;;  %v45_v17 = vsel %vm39_vm4, %v40_v12, %v41_v13  ;;  %vm47_vm7 = vcmp.lt.s32.totalorder %v33_v8, 2 }
  0x10   :  { %v55_v18 = vrot.slane %v43_v15, 6  ;;  %v56_v19 = vrot.slane %v44_v16, 4  ;;  %v57_v20 = vrot.slane %v45_v17, 2  ;;  %v68_v23 = vld.sshfl [vmem:[#allocation1] sm:$0xff pattern:$0x73625140] }
  0x11   :  { %v69_v24 = vld.sshfl [vmem:[#allocation1 + $0x8] sm:$0xff pattern:$0x73625140]  ;;  %v70_v26 = vld.sshfl [vmem:[#allocation1 + $0x10] sm:$0xff pattern:$0x73625140] }
  0x12   :  { %v59_v21 = vsel %vm58_vm1, %v42_v14, %v55_v18  ;;  %v61_v22 = vsel %vm60_vm5, %v56_v19, %v57_v20  ;;  %v71_v27 = vld.sshfl [vmem:[#allocation1 + $0x18] sm:$0xff pattern:$0x73625140]  ;;  %vm48_vm9 = vcmp.lt.s32.totalorder %v34_v9, 2  ;;  %vm49_vm10 = vcmp.lt.s32.totalorder %v35_v10, 2 }
  0x13   :  { %v63_v25 = vsel %vm62_vm6, %v59_v21, %v61_v22 }
  0x14   :  { %v65_v28 = vmin.f32 %v24_v0, %v63_v25 }
  0x16   :  { %77 = vst [vmem:[#allocation1] ss:$4 sm:$0xff] %v65_v28 }
  0x1d   :  { %v78_v29 = vld.sshfl [vmem:[#allocation1] sm:$0xff pattern:$0x73625140]  ;;  %v79_v30 = vld.sshfl [vmem:[#allocation1 + $0x8] sm:$0xff pattern:$0x73625140] }
  0x1e   :  { %v80_v31 = vld.sshfl [vmem:[#allocation1 + $0x10] sm:$0xff pattern:$0x73625140]  ;;  %v81_v32 = vld.sshfl [vmem:[#allocation1 + $0x18] sm:$0xff pattern:$0x73625140]  ;;  %v87_v33 = vsel %vm47_vm7, %v69_v24, %v79_v30  ;;  %v86_v37 = vsel %vm46_vm8, %v68_v23, %v78_v29 }
  0x1f   :  { %v88_v34 = vsel %vm48_vm9, %v70_v26, %v80_v31  ;;  %v89_v35 = vsel %vm49_vm10, %v71_v27, %v81_v32  ;;  %v94_v36 = vrot.slane %v87_v33, 6 }
  0x20   :  { %v95_v38 = vrot.slane %v88_v34, 4  ;;  %v96_v39 = vrot.slane %v89_v35, 2 }
  0x21   :  { %v97_v40 = vsel %vm58_vm1, %v86_v37, %v94_v36 }
  0x22   :  { %v98_v41 = vsel %vm60_vm5, %v95_v38, %v96_v39 }
  0x23   :  { %v99_v42 = vsel %vm62_vm6, %v97_v40, %v98_v41 }
  0x24   :  { %101 = vst [vmem:[%s162_s2] sm:$0xff] %v99_v42 }
  0x25   :  { %106 = vsyncpa [#allocation3], 1 }

</bundles_post_ra>
